<compile_context>
chip_gen: v7x
topology: tpu7x:2x2x1
jax: 0.10.0
libtpu: 0.0.40
codegen_flags: <defaults>
</compile_context>

<pallas_src>
import functools

import jax
import jax.numpy as jnp
from jax import lax
from jax.experimental import pallas as pl
from jax.experimental.pallas import tpu as pltpu

SMOOTH = 1.0         # BinaryDiceLoss(smooth=1.0)
THR = 0.2            # EdgeLoss(thr=0.2)
_NEG_CLAMP = -100.0  # PyTorch binary_cross_entropy log clamp

_LAPLACIAN = ((-1.0, -1.0, -1.0),
              (-1.0,  8.0, -1.0),
              (-1.0, -1.0, -1.0))


def _edge_loss_kernel(sel_ref, prob_ref, label_ref, stats_ref, *, h):
    # sel_ref:   (Bt, Bt*H) f32 block-selection matrix (VMEM-resident).
    # prob_ref / label_ref: (Bt*H, W) f32 — Bt images stacked along sublanes.
    # stats_ref: (1, Bt, 4) f32 — per-image [intersection, prob_sum, mask_sum, bce_sum].
    bth, w = prob_ref.shape

    x = prob_ref[...]
    y = label_ref[...]

    # ---- neighbour-validity masks: direct iota compares (no rolls, no casts).
    # pltpu.roll follows jnp.roll: roll(v, +1, ax)[i] = v[i-1] (left/up neighbour),
    # roll(v, n-1, ax)[i] = v[i+1] (right/down neighbour).  The row masks are
    # taken modulo H so the 3x3 halo is zeroed AND no leakage happens across
    # the stacked image bands along the folded batch axis.
    col = lax.broadcasted_iota(jnp.int32, (bth, w), 1)
    row_in = lax.broadcasted_iota(jnp.int32, (bth, w), 0) % h
    ok_l = col > 0
    ok_r = col < (w - 1)
    ok_u = row_in > 0
    ok_d = row_in < (h - 1)

    def laplacian(v):
        # lap = 9*v - box3x3(v); box3x3 computed separably with XLU rolls.
        left = jnp.where(ok_l, pltpu.roll(v, 1, axis=1), 0.0)
        right = jnp.where(ok_r, pltpu.roll(v, w - 1, axis=1), 0.0)
        hsum = v + left + right
        up = jnp.where(ok_u, pltpu.roll(hsum, 1, axis=0), 0.0)
        down = jnp.where(ok_d, pltpu.roll(hsum, bth - 1, axis=0), 0.0)
        box = hsum + up + down
        return 9.0 * v - box

    z = laplacian(x)                                   # edge logits of prob
    gt = (laplacian(y) > THR).astype(jnp.float32)      # binary gt edge map

    # b_prob = sigmoid(edge(prob)); BinaryDiceLoss re-applies sigmoid (PyTorch quirk).
    b_prob = jax.nn.sigmoid(z)
    p_dice = jax.nn.sigmoid(b_prob)

    # BCE exactly as PyTorch: log of the f32 probabilities, each log clamped at -100.
    log_p = jnp.maximum(jnp.log(b_prob), _NEG_CLAMP)
    log_1mp = jnp.maximum(jnp.log(1.0 - b_prob), _NEG_CLAMP)
    bce_e = -(gt * log_p + (1.0 - gt) * log_1mp)

    # ---- reductions: lane-reduce each stat map to a (Bt*H, 1) column, stack the
    # four columns, then one block-selection matmul on the (idle) MXU gives the
    # (Bt, 4) per-image stats tile directly.
    cols4 = jnp.concatenate(
        [jnp.sum(p_dice * gt, axis=1, keepdims=True),
         jnp.sum(p_dice, axis=1, keepdims=True),
         jnp.sum(gt, axis=1, keepdims=True),
         jnp.sum(bce_e, axis=1, keepdims=True)],
        axis=1)                                         # (Bt*H, 4)
    stats_ref[0] = jnp.dot(sel_ref[...], cols4,
                           preferred_element_type=jnp.float32)   # (Bt, 4)


def _pick_block_batch(b, h, w, budget_bytes=40 * 1024 * 1024):
    """Largest per-step batch tile Bt (divisor of B) such that the true VMEM
    peak (double-buffered inputs + ~8 tile-sized live f32 intermediates + the
    resident selection matrix) fits a conservative budget, the sublane extent
    Bt*H is legal (multiple of 8, unless the whole array), and — when B >= 2 —
    at least two grid steps remain so both v7x TensorCores get work."""
    per_image = h * w * 4

    def cost(bt):
        # 2 inputs x 2 pipeline buffers  +  ~8x tile of live f32 temporaries
        # (z, gt, b_prob, p_dice, log terms, bce_e, hsum/box)  +  sel (x2 safety).
        return 12 * bt * per_image + 2 * bt * bt * h * 4

    valid = [bt for bt in range(1, b + 1)
             if b % bt == 0 and (bt == b or (bt * h) % 8 == 0)]
    if b >= 2:
        capped = [bt for bt in valid if bt <= b // 2]
        valid = capped or valid
    fitting = [bt for bt in valid if cost(bt) <= budget_bytes]
    # TODO(synk): H-band halo fallback for huge single images (see header note).
    return max(fitting) if fitting else min(valid)


def edge_loss(prob, label):
    """prob: (B, 1, H, W); label: (B, H, W) or (B, 1, H, W). Returns scalar loss."""
    prob = prob.astype(jnp.float32)
    label = label.astype(jnp.float32)
    if label.ndim == 3:
        label = label[:, None]
    b, c, h, w = prob.shape
    assert c == 1, "EdgeLoss kernel supports C == 1 (binary segmentation)"
    assert label.shape == (b, 1, h, w), "predict & target shapes must match"
    assert h >= 3 and w >= 3, "roll-based 3x3 halo handling needs H, W >= 3"

    # Fold batch into the sublane axis: (B, 1, H, W) -> (B*H, W).  No padding.
    x2 = prob.reshape(b * h, w)
    y2 = label.reshape(b * h, w)

    bt = _pick_block_batch(b, h, w)
    g = b // bt

    # Block-selection matrix: sel[i, r] = 1 iff folded row r belongs to image i
    # of the current batch tile.  Built once here; VMEM-resident in the kernel.
    sel = (jnp.arange(bt * h) // h == jnp.arange(bt)[:, None]).astype(jnp.float32)

    stats = pl.pallas_call(
        functools.partial(_edge_loss_kernel, h=h),
        out_shape=jax.ShapeDtypeStruct((g, bt, 4), jnp.float32),
        grid=(g,),
        in_specs=[
            pl.BlockSpec((bt, bt * h), lambda i: (0, 0)),   # sel: constant block
            pl.BlockSpec((bt * h, w), lambda i: (i, 0)),
            pl.BlockSpec((bt * h, w), lambda i: (i, 0)),
        ],
        out_specs=pl.BlockSpec((1, bt, 4), lambda i: (i, 0, 0)),
        compiler_params=pltpu.CompilerParams(
            dimension_semantics=("parallel",),
            vmem_limit_bytes=48 * 1024 * 1024,
        ),
    )(sel, x2, y2)

    stats = stats.reshape(b, 4)
    inter, psum, msum, bce_sum = stats[:, 0], stats[:, 1], stats[:, 2], stats[:, 3]

    dice = jnp.mean(1.0 - (2.0 * inter + SMOOTH) / (psum + msum + SMOOTH))
    bce = jnp.sum(bce_sum) / (b * c * h * w)
    return dice + bce


def _edge_loss_ref(prob, label):
    """Pure-JAX reference mirroring the PyTorch forward (for validation)."""
    prob = prob.astype(jnp.float32)
    label = label.astype(jnp.float32)
    if label.ndim == 3:
        label = label[:, None]
    k = jnp.asarray(_LAPLACIAN, jnp.float32).reshape(1, 1, 3, 3)

    def edge(x):
        return lax.conv_general_dilated(
            x, k, window_strides=(1, 1), padding=((1, 1), (1, 1)),
            dimension_numbers=("NCHW", "OIHW", "NCHW"))

    gt = (edge(label) > THR).astype(jnp.float32)
    b_prob = jax.nn.sigmoid(edge(prob))

    n = prob.shape[0]
    pd = jax.nn.sigmoid(b_prob).reshape(n, -1)
    m = gt.reshape(n, -1)
    inter = (pd * m).sum(1)
    dice = jnp.mean(1.0 - (2.0 * inter + SMOOTH) / (pd.sum(1) + m.sum(1) + SMOOTH))

    log_p = jnp.maximum(jnp.log(b_prob), _NEG_CLAMP)
    log_1mp = jnp.maximum(jnp.log(1.0 - b_prob), _NEG_CLAMP)
    bce = jnp.mean(-(gt * log_p + (1.0 - gt) * log_1mp))
    return dice + bce


if __name__ == "__main__":
    key = jax.random.PRNGKey(0)
    k1, k2 = jax.random.split(key)
    # Small images; lane-aligned width keeps rolls/reductions vreg-dense.
    # B=4 -> Bt=2, grid=2: exercises both the batch tiling and the MXU segment-sum.
    B, C, H, W = 4, 1, 16, 128
    prob = jax.random.normal(k1, (B, C, H, W), jnp.float32)            # logits
    label = (jax.random.uniform(k2, (B, C, H, W)) > 0.5).astype(jnp.float32)

    loss = jax.block_until_ready(edge_loss(prob, label))
    ref = jax.block_until_ready(_edge_loss_ref(prob, label))

    assert jnp.isfinite(loss), "loss is not finite"
    assert jnp.allclose(loss, ref, rtol=1e-4, atol=1e-5), (loss, ref)
    print("KERNEL_OK")
</pallas_src>

<mosaic_0001>
module attributes {stable_mosaic.version = 11 : i64} {
  func.func @_edge_loss_kernel(%arg0: i32, %arg1: memref<2x32xf32, #tpu.memory_space<vmem>>, %arg2: memref<32x128xf32, #tpu.memory_space<vmem>>, %arg3: memref<32x128xf32, #tpu.memory_space<vmem>>, %arg4: memref<1x2x4xf32, #tpu.memory_space<vmem>>) attributes {dimension_semantics = [#tpu.dimension_semantics<parallel>], iteration_bounds = array<i64: 2>, scalar_prefetch = 0 : i64, scratch_operands = 0 : i64, tpu.core_type = #tpu.core_type<tc>, window_params = [{pipeline_mode = #tpu.pipeline_mode<synchronous>, transform_indices = @transform_0, window_bounds = array<i64: 2, 32>}, {transform_indices = @transform_1, window_bounds = array<i64: 32, 128>}, {transform_indices = @transform_2, window_bounds = array<i64: 32, 128>}, {transform_indices = @transform_3, window_bounds = array<i64: 1, 2, 4>}]} {
    %c0 = arith.constant 0 : index
    %c0_0 = arith.constant 0 : index
    %0 = vector.load %arg2[%c0, %c0_0] : memref<32x128xf32, #tpu.memory_space<vmem>>, vector<32x128xf32>
    %c0_1 = arith.constant 0 : index
    %c0_2 = arith.constant 0 : index
    %1 = vector.load %arg3[%c0_1, %c0_2] : memref<32x128xf32, #tpu.memory_space<vmem>>, vector<32x128xf32>
    %2 = tpu.iota {dimensions = array<i32: 1>} : vector<32x128xi32>
    %3 = tpu.iota {dimensions = array<i32: 0>} : vector<32x128xi32>
    %c16_i32 = arith.constant 16 : i32
    %c0_i32 = arith.constant 0 : i32
    %4 = arith.cmpi eq, %c16_i32, %c0_i32 : i32
    %c1_i32 = arith.constant 1 : i32
    %5 = arith.select %4, %c1_i32, %c16_i32 : i32
    %6 = vector.broadcast %5 : i32 to vector<32x128xi32>
    %7 = arith.remsi %3, %6 : vector<32x128xi32>
    %c0_i32_3 = arith.constant 0 : i32
    %8 = vector.broadcast %c0_i32_3 : i32 to vector<32x128xi32>
    %9 = arith.cmpi ne, %7, %8 : vector<32x128xi32>
    %c0_i32_4 = arith.constant 0 : i32
    %10 = vector.broadcast %c0_i32_4 : i32 to vector<32x128xi32>
    %11 = arith.cmpi slt, %7, %10 : vector<32x128xi32>
    %c0_i32_5 = arith.constant 0 : i32
    %12 = arith.cmpi slt, %5, %c0_i32_5 : i32
    %13 = vector.broadcast %12 : i1 to vector<32x128xi1>
    %14 = vector.broadcast %13 : vector<32x128xi1> to vector<32x128xi1>
    %15 = arith.xori %11, %14 : vector<32x128xi1>
    %16 = arith.andi %15, %9 : vector<32x128xi1>
    %17 = vector.broadcast %5 : i32 to vector<32x128xi32>
    %18 = arith.addi %7, %17 : vector<32x128xi32>
    %19 = arith.select %16, %18, %7 : vector<32x128xi1>, vector<32x128xi32>
    %c0_i32_6 = arith.constant 0 : i32
    %20 = vector.broadcast %c0_i32_6 : i32 to vector<32x128xi32>
    %21 = arith.cmpi sgt, %2, %20 : vector<32x128xi32>
    %c127_i32 = arith.constant 127 : i32
    %22 = vector.broadcast %c127_i32 : i32 to vector<32x128xi32>
    %23 = arith.cmpi slt, %2, %22 : vector<32x128xi32>
    %c0_i32_7 = arith.constant 0 : i32
    %24 = vector.broadcast %c0_i32_7 : i32 to vector<32x128xi32>
    %25 = arith.cmpi sgt, %19, %24 : vector<32x128xi32>
    %c15_i32 = arith.constant 15 : i32
    %26 = vector.broadcast %c15_i32 : i32 to vector<32x128xi32>
    %27 = arith.cmpi slt, %19, %26 : vector<32x128xi32>
    %c1_i32_8 = arith.constant 1 : i32
    %28 = tpu.dynamic_rotate %0 by %c1_i32_8 dim 1 : vector<32x128xf32>, i32 -> vector<32x128xf32>
    %cst = arith.constant 0.000000e+00 : f32
    %29 = vector.broadcast %cst : f32 to vector<32x128xf32>
    %30 = arith.select %21, %28, %29 : vector<32x128xi1>, vector<32x128xf32>
    %c127_i32_9 = arith.constant 127 : i32
    %31 = tpu.dynamic_rotate %0 by %c127_i32_9 dim 1 : vector<32x128xf32>, i32 -> vector<32x128xf32>
    %cst_10 = arith.constant 0.000000e+00 : f32
    %32 = vector.broadcast %cst_10 : f32 to vector<32x128xf32>
    %33 = arith.select %23, %31, %32 : vector<32x128xi1>, vector<32x128xf32>
    %34 = arith.addf %0, %30 : vector<32x128xf32>
    %35 = arith.addf %34, %33 : vector<32x128xf32>
    %c1_i32_11 = arith.constant 1 : i32
    %36 = tpu.dynamic_rotate %35 by %c1_i32_11 dim 0 : vector<32x128xf32>, i32 -> vector<32x128xf32>
    %cst_12 = arith.constant 0.000000e+00 : f32
    %37 = vector.broadcast %cst_12 : f32 to vector<32x128xf32>
    %38 = arith.select %25, %36, %37 : vector<32x128xi1>, vector<32x128xf32>
    %c31_i32 = arith.constant 31 : i32
    %39 = tpu.dynamic_rotate %35 by %c31_i32 dim 0 : vector<32x128xf32>, i32 -> vector<32x128xf32>
    %cst_13 = arith.constant 0.000000e+00 : f32
    %40 = vector.broadcast %cst_13 : f32 to vector<32x128xf32>
    %41 = arith.select %27, %39, %40 : vector<32x128xi1>, vector<32x128xf32>
    %42 = arith.addf %35, %38 : vector<32x128xf32>
    %43 = arith.addf %42, %41 : vector<32x128xf32>
    %cst_14 = arith.constant 9.000000e+00 : f32
    %44 = vector.broadcast %cst_14 : f32 to vector<32x128xf32>
    %45 = arith.mulf %44, %0 : vector<32x128xf32>
    %46 = arith.subf %45, %43 : vector<32x128xf32>
    %c1_i32_15 = arith.constant 1 : i32
    %47 = tpu.dynamic_rotate %1 by %c1_i32_15 dim 1 : vector<32x128xf32>, i32 -> vector<32x128xf32>
    %cst_16 = arith.constant 0.000000e+00 : f32
    %48 = vector.broadcast %cst_16 : f32 to vector<32x128xf32>
    %49 = arith.select %21, %47, %48 : vector<32x128xi1>, vector<32x128xf32>
    %c127_i32_17 = arith.constant 127 : i32
    %50 = tpu.dynamic_rotate %1 by %c127_i32_17 dim 1 : vector<32x128xf32>, i32 -> vector<32x128xf32>
    %cst_18 = arith.constant 0.000000e+00 : f32
    %51 = vector.broadcast %cst_18 : f32 to vector<32x128xf32>
    %52 = arith.select %23, %50, %51 : vector<32x128xi1>, vector<32x128xf32>
    %53 = arith.addf %1, %49 : vector<32x128xf32>
    %54 = arith.addf %53, %52 : vector<32x128xf32>
    %c1_i32_19 = arith.constant 1 : i32
    %55 = tpu.dynamic_rotate %54 by %c1_i32_19 dim 0 : vector<32x128xf32>, i32 -> vector<32x128xf32>
    %cst_20 = arith.constant 0.000000e+00 : f32
    %56 = vector.broadcast %cst_20 : f32 to vector<32x128xf32>
    %57 = arith.select %25, %55, %56 : vector<32x128xi1>, vector<32x128xf32>
    %c31_i32_21 = arith.constant 31 : i32
    %58 = tpu.dynamic_rotate %54 by %c31_i32_21 dim 0 : vector<32x128xf32>, i32 -> vector<32x128xf32>
    %cst_22 = arith.constant 0.000000e+00 : f32
    %59 = vector.broadcast %cst_22 : f32 to vector<32x128xf32>
    %60 = arith.select %27, %58, %59 : vector<32x128xi1>, vector<32x128xf32>
    %61 = arith.addf %54, %57 : vector<32x128xf32>
    %62 = arith.addf %61, %60 : vector<32x128xf32>
    %cst_23 = arith.constant 9.000000e+00 : f32
    %63 = vector.broadcast %cst_23 : f32 to vector<32x128xf32>
    %64 = arith.mulf %63, %1 : vector<32x128xf32>
    %65 = arith.subf %64, %62 : vector<32x128xf32>
    %cst_24 = arith.constant 2.000000e-01 : f32
    %66 = vector.broadcast %cst_24 : f32 to vector<32x128xf32>
    %67 = arith.cmpf ogt, %65, %66 : vector<32x128xf32>
    %68 = arith.extui %67 : vector<32x128xi1> to vector<32x128xi32>
    %69 = arith.sitofp %68 : vector<32x128xi32> to vector<32x128xf32>
    %70 = arith.negf %46 : vector<32x128xf32>
    %71 = math.exp %70 : vector<32x128xf32>
    %cst_25 = arith.constant 1.000000e+00 : f32
    %72 = vector.broadcast %cst_25 : f32 to vector<32x128xf32>
    %73 = arith.addf %72, %71 : vector<32x128xf32>
    %74 = arith.divf %72, %73 : vector<32x128xf32>
    %75 = arith.negf %74 : vector<32x128xf32>
    %76 = math.exp %75 : vector<32x128xf32>
    %cst_26 = arith.constant 1.000000e+00 : f32
    %77 = vector.broadcast %cst_26 : f32 to vector<32x128xf32>
    %78 = arith.addf %77, %76 : vector<32x128xf32>
    %79 = arith.divf %77, %78 : vector<32x128xf32>
    %80 = math.log %74 : vector<32x128xf32>
    %cst_27 = arith.constant -1.000000e+02 : f32
    %81 = vector.broadcast %cst_27 : f32 to vector<32x128xf32>
    %82 = arith.maximumf %80, %81 : vector<32x128xf32>
    %cst_28 = arith.constant 1.000000e+00 : f32
    %83 = vector.broadcast %cst_28 : f32 to vector<32x128xf32>
    %84 = arith.subf %83, %74 : vector<32x128xf32>
    %85 = math.log %84 : vector<32x128xf32>
    %cst_29 = arith.constant -1.000000e+02 : f32
    %86 = vector.broadcast %cst_29 : f32 to vector<32x128xf32>
    %87 = arith.maximumf %85, %86 : vector<32x128xf32>
    %88 = arith.mulf %69, %82 : vector<32x128xf32>
    %cst_30 = arith.constant 1.000000e+00 : f32
    %89 = vector.broadcast %cst_30 : f32 to vector<32x128xf32>
    %90 = arith.subf %89, %69 : vector<32x128xf32>
    %91 = arith.mulf %90, %87 : vector<32x128xf32>
    %92 = arith.addf %88, %91 : vector<32x128xf32>
    %cst_31 = arith.constant 0.000000e+00 : f32
    %93 = vector.broadcast %cst_31 : f32 to vector<32x128xf32>
    %94 = arith.subf %93, %92 : vector<32x128xf32>
    %95 = arith.mulf %79, %69 : vector<32x128xf32>
    %cst_32 = arith.constant dense<0.000000e+00> : vector<32xf32>
    %96 = vector.multi_reduction <add>, %95, %cst_32 [1] : vector<32x128xf32> to vector<32xf32>
    %97 = vector.shape_cast %96 : vector<32xf32> to vector<32x1xf32>
    %cst_33 = arith.constant dense<0.000000e+00> : vector<32xf32>
    %98 = vector.multi_reduction <add>, %79, %cst_33 [1] : vector<32x128xf32> to vector<32xf32>
    %99 = vector.shape_cast %98 : vector<32xf32> to vector<32x1xf32>
    %cst_34 = arith.constant dense<0.000000e+00> : vector<32xf32>
    %100 = vector.multi_reduction <add>, %69, %cst_34 [1] : vector<32x128xf32> to vector<32xf32>
    %101 = vector.shape_cast %100 : vector<32xf32> to vector<32x1xf32>
    %cst_35 = arith.constant dense<0.000000e+00> : vector<32xf32>
    %102 = vector.multi_reduction <add>, %94, %cst_35 [1] : vector<32x128xf32> to vector<32xf32>
    %103 = vector.shape_cast %102 : vector<32xf32> to vector<32x1xf32>
    %104 = tpu.concatenate %97, %99, %101, %103 in 1 : vector<32x1xf32>, vector<32x1xf32>, vector<32x1xf32>, vector<32x1xf32> -> vector<32x4xf32>
    %c0_36 = arith.constant 0 : index
    %c0_37 = arith.constant 0 : index
    %105 = vector.load %arg1[%c0_36, %c0_37] : memref<2x32xf32, #tpu.memory_space<vmem>>, vector<2x32xf32>
    %cst_38 = arith.constant dense<0.000000e+00> : vector<2x4xf32>
    %106 = tpu.matmul %105, %104, %cst_38 {dimension_numbers = #tpu.dot_dimension_numbers<[1], [0], [0], [1], [0, 0, 1, 1], [], []>} : vector<2x32xf32>, vector<32x4xf32>, vector<2x4xf32> -> vector<2x4xf32>
    %c0_39 = arith.constant 0 : index
    %c0_40 = arith.constant 0 : index
    %c0_41 = arith.constant 0 : index
    %107 = vector.load %arg4[%c0_39, %c0_40, %c0_41] : memref<1x2x4xf32, #tpu.memory_space<vmem>>, vector<1x2x4xf32>
    %108 = vector.shape_cast %107 : vector<1x2x4xf32> to vector<2x4xf32>
    %109 = vector.shape_cast %106 : vector<2x4xf32> to vector<1x2x4xf32>
    tpu.vector_store %arg4[%c0_39, %c0_40, %c0_41], %109 {strides = array<i32>} : memref<1x2x4xf32, #tpu.memory_space<vmem>>, vector<1x2x4xf32>,
    return
  }
  func.func @transform_0(%arg0: i32) -> (i32, i32) {
    %c0_i32 = arith.constant 0 : i32
    %c0_i32_0 = arith.constant 0 : i32
    %c0_i32_1 = arith.constant 0 : i32
    return %c0_i32, %c0_i32_0 : i32, i32
  }
  func.func @transform_1(%arg0: i32) -> (i32, i32) {
    %c0_i32 = arith.constant 0 : i32
    %c0_i32_0 = arith.constant 0 : i32
    return %arg0, %c0_i32 : i32, i32
  }
  func.func @transform_2(%arg0: i32) -> (i32, i32) {
    %c0_i32 = arith.constant 0 : i32
    %c0_i32_0 = arith.constant 0 : i32
    return %arg0, %c0_i32 : i32, i32
  }
  func.func @transform_3(%arg0: i32) -> (i32, i32, i32) {
    %c0_i32 = arith.constant 0 : i32
    %c0_i32_0 = arith.constant 0 : i32
    %c0_i32_1 = arith.constant 0 : i32
    return %arg0, %c0_i32, %c0_i32_0 : i32, i32, i32
  }
}

</mosaic_0001>

<bundles_post_ra>
// kernel: tpu_custom_call.1
= control target key start
LH: loop header
LB: loop body
LE: loop exit
PB: predicated region body
PF: predicated region fallthrough
CT: control target
= control target key end

     0   :  { %8 = vsyncpa [#allocation3], 0  ;;  %s1652_s0 = inlined_call_operand.hbm [shape: f32[2,32], index: 0, kind: input, shape index: {}]   ;;  %s1653_s1 = inlined_call_operand.hbm [shape: f32[64,128], index: 1, kind: input, shape index: {}]   ;;  %s1654_s2 = inlined_call_operand.hbm [shape: f32[64,128], index: 2, kind: input, shape index: {}]   ;;  %s1655_s3 = inlined_call_operand.hbm [shape: f32[2,2,4], index: 3, kind: output, shape index: {}]  }
   0x1   :  { %9 = vsyncpa [#allocation6], 0 }
   0x2   :  { %11 = vsyncpa [#allocation6 + $0x1], 0 }
   0x3   :  { %12 = vsyncpa [#allocation4], 0 }
   0x4   :  { %14 = vsyncpa [#allocation4 + $0x1], 0  ;;  %s1176_s12 = smov 0   ;;  %s1178_s13 = smov 0  }
   0x5   :  { %s1180_s14 = smov 0   ;;  %s1182_s15 = smov 0  }
   0x6 LB: > { %s1197_s16 = sadd.s32 1, %s1143_s15   ;;  %s48_s17 = sadd.s32 1, %s1139_s14  ;;  %s1143_s15 = sphi %s1182_s15, %s1686_s15   ;;  %s1139_s14 = sphi %s1180_s14, %s1685_s14   ;;  %s1135_s13 = sphi %s1178_s13, %s1684_s13   ;;  %s1131_s12 = sphi %s1176_s12, %s1683_s12  }
   0x7   : > { %s45_s18 = ssub.s32 %s1143_s15, %s1197_s16  ;;  %p55_p0 = scmp.ne.s32.totalorder %s1139_s14, %s1135_s13 }
   0x8   : > { %p46_p1 = scmp.eq.s32.totalorder %s45_s18, 0  ;;  %p56_p2 = scmp.eq.s32.totalorder %s1143_s15, 0 }
   0x9   : > { %p894_p4 = scmp.lt.s32.totalorder %s1143_s15, 2  ;;  %s148_s20 = sand.u32 1, %s1143_s15  }
   0xa   : > { %s1208_s19 = scalar_select %p46_p1, %s1139_s14, %s48_s17  }
   0xb   : > { %p57_p5 = por %p56_p2, %p55_p0  ;;  %s150_s21 = sand.u32 1, %s1139_s14  }
   0xc   : > { %s1215_s22 = sshll.u32 %s150_s21, 5  ;;  %s844_s23 = sshll.u32 %s1143_s15, 9 }
   0xd   : > { %s1223_s26 = scalar_lea.hbm %s1653_s1, %s844_s23  ;;  %s152_s27 = scalar_lea.vmem [#allocation5], %s1215_s22 }
   0xe   : > { %s159_s28 = sshll.u32 %s152_s27, 4  ;;  %p1226_p6 = pnand %p894_p4, %p57_p5  ;;  %s1230_s28 = int_to_ptr.vmem [resolvable:$true] %s159_s28 }
   0xf   : > { %s1232_s30 = scalar_lea.sflag [#allocation6], %s148_s20  ;;  %s985_s4 = scalar_lea.hbm %s1223_s26, 512 }
  0x10   : > { %p986_p7 = scmp.ne.s32.totalorder %s1223_s26, %s985_s4  ;;  %p987_p8 = pneg %p1226_p6 }
  0x11   : > { %s990_s7 = scalar_lea.hbm %s1653_s1, 1024  ;;  %p991_p11 = scmp.lt.u32.totalorder %s1223_s26, %s1653_s1 }
  0x12   : > { %p988_p9 = pnand %p987_p8, %p986_p7  ;;  %p992_p12 = scmp.lt.u32.totalorder %s990_s7, %s985_s4 }
  0x13   : > { %p994_p1 = scmp.lt.u32.totalorder %s985_s4, %s1223_s26 }
  0x14   : > { %p989_p10 = pneg %p988_p9  ;;  %p993_p13 = por %p992_p12, %p991_p11 }
  0x16   : > { %p995_p2 = por %p994_p1, %p993_p13 }
  0x18   : > { %p996_p4 = pnand %p995_p2, %p989_p10 }
  0x1a   : > { %999 = shalt.err (!%p996_p4)
}
  0x1b   : > { %s1000_s10 = scalar_lea.vmem %s1230_s28, 512  ;;  %s1145_s11 = smov [#allocation5]  }
  0x1c   : > { %p1001_p5 = scmp.ne.s32.totalorder %s1230_s28, %s1000_s10  ;;  %s1005_s17 = sshll.u32 %s1145_s11, 4  ;;  %s1006_s17 = int_to_ptr.vmem [resolvable:$false] %s1005_s17 }
  0x1d   : > { %s1007_s18 = scalar_lea.vmem %s1006_s17, 1024  ;;  %p1008_p3 = scmp.lt.s32.totalorder %s1230_s28, %s1006_s17 }
  0x1e   : > { %p1003_p7 = pnand %p1001_p5, %p987_p8  ;;  %p1009_p11 = scmp.lt.s32.totalorder %s1007_s18, %s1000_s10 }
  0x20   : > { %p1004_p9 = pneg %p1003_p7  ;;  %p1010_p12 = por %p1009_p11, %p1008_p3 }
  0x22   : > { %p1011_p13 = pnand %p1010_p12, %p1004_p9 }
  0x24   : > { %1014 = shalt.err (!%p1011_p13)
}
  0x25   : > { %s1146_s20 = smov 128   ;;  %s1147_s21 = smov 8  }
  0x26   : > { %885 = dma.hbm_to_vmem [thread:$0]  (!%p1226_p6), %s1223_s26, 512, %s1230_s28, %s1232_s30, %s1146_s20, %s1146_s20, %s1147_s21  }
  0x27   : > { %s173_s24 = scalar_lea.vmem [#allocation7], %s1215_s22  ;;  %s1265_s27 = sadd.s32 4294967295, %s1143_s15  }
  0x28   : > { %s180_s25 = sshll.u32 %s173_s24, 4  ;;  %s812_s4 = sadd.s32 4294967294, %s1143_s15   ;;  %s1298_s25 = int_to_ptr.vmem [resolvable:$true] %s180_s25 }
  0x29   : > { %p61_p3 = scmp.ne.s32.totalorder %s1135_s13, %s1131_s12  ;;  %p1656_p10 = scmp.eq.s32.totalorder %s1265_s27, 0 }
  0x2a   : > { %p111_p1 = scmp.eq.s32.totalorder %s1265_s27, 1  ;;  %p117_p2 = scmp.eq.s32.totalorder %s812_s4, 1 }
  0x2b   : > { %p1274_p4 = por %p1656_p10, %p61_p3  ;;  %p813_p5 = scmp.ge.s32.totalorder %s1143_s15, 1 }
  0x2c   : > { %p1282_p7 = por %p111_p1, %p55_p0  ;;  %p1286_p9 = por %p117_p2, %p61_p3 }
  0x2d   : > { %s1661_s5 = scalar_select %p1274_p4, 1, 0 }
  0x2e   : > { %s1662_s22 = scalar_select %p1282_p7, 1, 0 }
  0x2f   : > { %s1663_s26 = scalar_select %p1286_p9, 1, 0 }
  0x30   : > { %p124_p11 = scmp.lt.s32.totalorder %s1143_s15, 3  ;;  %s1296_s7 = scalar_lea.hbm %s1654_s2, %s844_s23 }
  0x31   : > { %s1148_s9 = smov [#allocation2]   ;;  %s1015_s11 = scalar_lea.hbm %s1296_s7, 512 }
  0x32   : > { %p1300_p0 = pnand %p813_p5, %p124_p11  ;;  %s1304_s10 = sshll.u32 %s1148_s9, 4  ;;  %s138_s10 = int_to_ptr.vmem [resolvable:$true] %s1304_s10 }
  0x33   : > { %p1016_p13 = scmp.ne.s32.totalorder %s1296_s7, %s1015_s11  ;;  %s1020_s18 = scalar_lea.hbm %s1654_s2, 1024 }
  0x34   : > { %s1664_s8 = scalar_select %p1300_p0, 1, 0 }
  0x35   : > { %p1018_p3 = pnand %p1016_p13, %p987_p8  ;;  %p1021_p2 = scmp.lt.u32.totalorder %s1296_s7, %s1654_s2 }
  0x36   : > { %p1022_p5 = scmp.lt.u32.totalorder %s1020_s18, %s1015_s11  ;;  %p1024_p10 = scmp.lt.u32.totalorder %s1015_s11, %s1296_s7 }
  0x37   : > { %p1019_p1 = pneg %p1018_p3 }
  0x38   : > { %p1023_p11 = por %p1022_p5, %p1021_p2 }
  0x3a   : > { %p1025_p9 = por %p1024_p10, %p1023_p11 }
  0x3c   : > { %p1026_p7 = pnand %p1025_p9, %p1019_p1 }
  0x3e   : > { %1029 = shalt.err (!%p1026_p7)
}
  0x3f   : > { %s1030_s28 = scalar_lea.vmem %s1298_s25, 512  ;;  %s1149_s6 = smov [#allocation7]  }
  0x40   : > { %p1031_p13 = scmp.ne.s32.totalorder %s1298_s25, %s1030_s28  ;;  %s1035_s9 = sshll.u32 %s1149_s6, 4  ;;  %s1036_s9 = int_to_ptr.vmem [resolvable:$false] %s1035_s9 }
  0x41   : > { %s1037_s23 = scalar_lea.vmem %s1036_s9, 1024  ;;  %p1038_p4 = scmp.lt.s32.totalorder %s1298_s25, %s1036_s9 }
  0x42   : > { %p1033_p3 = pnand %p1031_p13, %p987_p8  ;;  %p1039_p2 = scmp.lt.s32.totalorder %s1037_s23, %s1030_s28 }
  0x44   : > { %p1034_p12 = pneg %p1033_p3  ;;  %p1040_p5 = por %p1039_p2, %p1038_p4 }
  0x46   : > { %p1041_p10 = pnand %p1040_p5, %p1034_p12 }
  0x48   : > { %1044 = shalt.err (!%p1041_p10)
}
  0x49   : > { %888 = dma.hbm_to_vmem [thread:$0]  (!%p1226_p6), %s1296_s7, 512, %s1298_s25, %s1232_s30, %s1146_s20, %s1146_s20, %s1147_s21  }
  0x4a   : > { %p1665_p8 = scmp.eq.s32.totalorder %s1265_s27, 0  ;;  %p1666_p7 = pneg %p1300_p0 }
  0x4b   : > { %s1045_s18 = scalar_lea.hbm %s1652_s0, 32 }
  0x4c   : > { %p1341_p9 = pnand %p1666_p7, %p1665_p8  ;;  %p1046_p4 = scmp.ne.s32.totalorder %s1652_s0, %s1045_s18 }
  0x4d   : > { %p1052_p11 = scmp.lt.u32.totalorder %s1045_s18, %s1652_s0 }
  0x4e   : > { %p1047_p12 = pneg %p1341_p9 }
  0x50   : > { %p1048_p6 = pnand %p1047_p12, %p1046_p4 }
  0x52   : > { %p1049_p1 = pneg %p1048_p6 }
  0x54   : > { %p1054_p13 = pnand %p1052_p11, %p1049_p1 }
  0x56   : > { %1057 = shalt.err (!%p1054_p13)
}
  0x57   : > { %s1058_s21 = scalar_lea.vmem %s138_s10, 32  ;;  %p1066_p10 = scmp.lt.s32.totalorder %s138_s10, %s138_s10 }
  0x58   : > { %p1059_p3 = scmp.ne.s32.totalorder %s138_s10, %s1058_s21  ;;  %p1067_p8 = scmp.lt.s32.totalorder %s1058_s21, %s1058_s21 }
  0x5a   : > { %p1061_p2 = pnand %p1059_p3, %p1047_p12  ;;  %p1068_p7 = por %p1067_p8, %p1066_p10 }
  0x5c   : > { %p1062_p5 = pneg %p1061_p2 }
  0x5e   : > { %p1069_p0 = pnand %p1068_p7, %p1062_p5 }
  0x60   : > { %1072 = shalt.err (!%p1069_p0)
}
  0x61   : > { %881 = dma.hbm_to_vmem [thread:$0]  (!%p1341_p9), %s1652_s0, 32, %s138_s10, [#allocation3]  }
  0x62   : > { %p1668_p4 = scmp.ne.s32.totalorder %s1664_s8, 0 }
  0x63   : > { %p1669_p6 = scmp.eq.s32.totalorder (!%p1668_p4), %s1265_s27, 0 }
  0x64   : > { %192 = sbr.rel (%p1668_p4) target bundleno = 705 (0x2c1), region = 32 }
  0x6b   : > { %1118 = dma.done.wait (%p1669_p6), [#allocation3], 32   ;;  %p1670_p12 = pmov %p1669_p6 }
  0x6c   : > { %s198_s28 = sand.u32 1, %s1265_s27   ;;  %s1369_s6 = sand.u32 1, %s1135_s13  }
  0x6d   : > { %1120 = vsyncadd (%p1670_p12), [#allocation3], 4294967264  ;;  %s824_s9 = sshll.u32 %s1369_s6, 5  ;;  %s199_s23 = scalar_lea.sflag [#allocation6], %s198_s28 }
  0x6e   : > { %s202_s11 = scalar_lea.vmem [#allocation5], %s824_s9  ;;  %p1671_p0 = scmp.ne.s32.totalorder %s1661_s5, 0 }
  0x70   : > { %1122 = dma.done.wait (%p1671_p0), %s199_s23, 1024  }
  0x71   : > { %1124 = vsyncadd (%p1671_p0), %s199_s23, 4294966272  ;;  %v1376_v0 = vld [vmem:[%s202_s11 + $0x8] sm:$0xff]  ;;  %v1378_v1 = vld [vmem:[%s202_s11] sm:$0xff]  ;;  %s1150_s8 = smov 1   ;;  %s1151_s10 = smov 127   ;;  %v249_v8 = vlaneseq  ;;  %vm1154_vm12 = vmmov 0  }
  0x72   : > { %316 = vrot.lane.b32.xlu1 %v1376_v0, %s1150_s8  ;;  %314 = vrot.lane.b32.xlu0 %v1378_v1, %s1150_s8  ;;  %v1382_v2 = vld [vmem:[%s202_s11 + $0x10] sm:$0xff]  ;;  %v1384_v3 = vld [vmem:[%s202_s11 + $0x18] sm:$0xff]  ;;  %s211_s5 = scalar_lea.vmem [#allocation7], %s824_s9  ;;  %v381_v45 = vmul.f32 9.0, %v1376_v0  ;;  %v380_v49 = vmul.f32 9.0, %v1378_v1  ;;  %vm604_vm13 = vcmask 7168  }
  0x73   : > { %v1392_v4 = vld [vmem:[%s211_s5] sm:$0xff]  ;;  %v1394_v5 = vld [vmem:[%s211_s5 + $0x18] sm:$0xff]  ;;  %v1398_v6 = vld [vmem:[%s211_s5 + $0x8] sm:$0xff]  ;;  %v1408_v9 = vand.u32 127, %v249_v8  ;;  %v1410_v12 = vshrl.u32 %v249_v8, 7  ;;  %v383_v50 = vmul.f32 9.0, %v1384_v3 }
  0x74   : > { %v1400_v7 = vld [vmem:[%s211_s5 + $0x10] sm:$0xff]  ;;  %vm609_vm14 = vcmask 15360   ;;  %vm614_vm15 = vcmask 23552   ;;  %s826_s17 = sshll.u32 %s1369_s6, 1  ;;  %s841_s29 = sshll.u32 %s1265_s27, 5 }
  0x75   : > { %vm304_vm0 = vcmp.gt.s32.totalorder %v1408_v9, 0  ;;  %vm305_vm1 = vcmp.lt.s32.totalorder %v1408_v9, 127  ;;  %v255_v17 = vadd.s32 24, %v1410_v12  ;;  %v260_v18 = vand.u32 15, %v1410_v12  ;;  %s238_s18 = scalar_lea.vmem [#allocation8], %s826_s17  ;;  %s1608_s20 = scalar_lea.hbm %s1655_s3, %s841_s29 }
  0x76   : > { %318 = vrot.lane.b32.xlu1 %v1382_v2, %s1150_s8  ;;  %320 = vrot.lane.b32.xlu0 %v1384_v3, %s1150_s8  ;;  %v253_v19 = vadd.s32 8, %v1410_v12  ;;  %v254_v20 = vadd.s32 16, %v1410_v12  ;;  %vm350_vm2 = vcmp.lt.s32.totalorder %v1410_v12, 1  ;;  %vm363_vm4 = vcmp.lt.s32.totalorder %v1410_v12, 7  ;;  %s710_s24 = sshll.u32 %s238_s18, 4  ;;  %s697_s21 = scalar_lea.sflag [#allocation4], %s1369_s6  ;;  %s1610_s24 = int_to_ptr.vmem [resolvable:$true] %s710_s24 }
  0x77   : > { %v281_v30 = vand.u32 15, %v255_v17  ;;  %vm1435_vm3 = vcmp.gt.s32.totalorder %v260_v18, 0  ;;  %v455_v12 = vmul.f32 9.0, %v1394_v5  ;;  %s1073_s25 = scalar_lea.vmem %s1610_s24, 32  ;;  %p1680_p1 = scmp.ne.s32.totalorder %s1662_s22, 0 }
  0x78   : > { %v267_v33 = vand.u32 15, %v253_v19  ;;  %v274_v34 = vand.u32 15, %v254_v20  ;;  %p1074_p9 = scmp.ne.s32.totalorder %s1610_s24, %s1073_s25  ;;  %s1155_s27 = smov [#allocation8]  }
  0x79   : > { %vm1453_vm5 = vcmp.lt.s32.totalorder %v281_v30, 15  ;;  %s1077_s7 = sshll.u32 %s1155_s27, 4  ;;  %s1078_s7 = int_to_ptr.vmem [resolvable:$false] %s1077_s7 }
  0x7a   : > { %332 = vrot.lane.b32.xlu1 %v1384_v3, %s1151_s10  ;;  %326 = vrot.lane.b32.xlu0 %v1378_v1, %s1151_s10  ;;  %vm1461_vm6 = vcmp.lt.s32.totalorder %v267_v33, 15  ;;  %vm1465_vm7 = vcmp.gt.s32.totalorder %v274_v34, 0  ;;  %p1075_p11 = pnand %p1074_p9, %p1680_p1  ;;  %s1079_s28 = scalar_lea.vmem %s1078_s7, 64 }
  0x7b   : > { %p1080_p3 = scmp.lt.s32.totalorder %s1610_s24, %s1078_s7  ;;  %p1081_p2 = scmp.lt.s32.totalorder %s1079_s28, %s1073_s25 }
  0x7c   : > { %p1076_p13 = pneg %p1075_p11 }
  0x7d   : > { %p1082_p5 = por %p1081_p2, %p1080_p3 }
  0x7e   : > { %330 = vrot.lane.b32.xlu1 %v1382_v2, %s1151_s10  ;;  %328 = vrot.lane.b32.xlu0 %v1376_v0, %s1151_s10 }
  0x7f   : > { %p1083_p10 = pnand %p1082_p5, %p1076_p13 }
  0x82   : > { %388 = vrot.lane.b32.xlu0 %v1392_v4, %s1150_s8  ;;  %394 = vrot.lane.b32.xlu1 %v1394_v5, %s1150_s8 }
  0x86   : > { %390 = vrot.lane.b32.xlu0 %v1398_v6, %s1150_s8  ;;  %392 = vrot.lane.b32.xlu1 %v1400_v7, %s1150_s8 }
  0x8a   : > { %400 = vrot.lane.b32.xlu0 %v1392_v4, %s1151_s10  ;;  %406 = vrot.lane.b32.xlu1 %v1394_v5, %s1151_s10 }
  0x8e   : > { %402 = vrot.lane.b32.xlu0 %v1398_v6, %s1151_s10  ;;  %404 = vrot.lane.b32.xlu1 %v1400_v7, %s1151_s10 }
  0xe4   : > { %v317_v10 = vpop.permute.xlu1 %316  ;;  %v315_v11 = vpop.permute.xlu0 %314 }
  0xe5   : > { %v322_v15 = vsel %vm304_vm0, %v315_v11, 0.0  ;;  %v323_v25 = vsel %vm304_vm0, %v317_v10, 0.0 }
  0xe6   : > { %v338_v21 = vadd.f32 %v322_v15, %v1378_v1  ;;  %v339_v35 = vadd.f32 %v323_v25, %v1376_v0 }
  0xe8   : > { %v319_v13 = vpop.permute.xlu1 %318  ;;  %v321_v14 = vpop.permute.xlu0 %320 }
  0xe9   : > { %v325_v16 = vsel %vm304_vm0, %v321_v14, 0.0  ;;  %v324_v26 = vsel %vm304_vm0, %v319_v13, 0.0 }
  0xea   : > { %v341_v22 = vadd.f32 %v325_v16, %v1384_v3  ;;  %v340_v36 = vadd.f32 %v324_v26, %v1382_v2 }
  0xec   : > { %v333_v23 = vpop.permute.xlu1 %332  ;;  %v327_v24 = vpop.permute.xlu0 %326 }
  0xed   : > { %v337_v27 = vsel %vm305_vm1, %v333_v23, 0.0  ;;  %v334_v28 = vsel %vm305_vm1, %v327_v24, 0.0 }
  0xee   : > { %v1432_v29 = vadd.f32 %v341_v22, %v337_v27  ;;  %v342_v31 = vadd.f32 %v338_v21, %v334_v28  ;;  %v382_v28 = vmul.f32 9.0, %v1382_v2 }
  0xf0   : > { %v349_v37 = vrot.slane %v1432_v29, 7  ;;  %v346_v38 = vrot.slane %v342_v31, 7  ;;  %v331_v39 = vpop.permute.xlu1 %330  ;;  %v329_v40 = vpop.permute.xlu0 %328  ;;  %v362_v41 = vrot.slane %v1432_v29, 1  ;;  %v359_v42 = vrot.slane %v342_v31, 1 }
  0xf1   : > { %v336_v43 = vsel %vm305_vm1, %v331_v39, 0.0  ;;  %v335_v44 = vsel %vm305_vm1, %v329_v40, 0.0 }
  0xf2   : > { %v354_v46 = vsel %vm350_vm2, %v349_v37, %v346_v38  ;;  %v344_v47 = vadd.f32 %v340_v36, %v336_v43  ;;  %v343_v48 = vadd.f32 %v339_v35, %v335_v44  ;;  %v367_v59 = vsel %vm363_vm4, %v362_v41, %v359_v42 }
  0xf3   : > { %v355_v52 = vsel %vm1435_vm3, %v354_v46, 0.0  ;;  %v371_v14 = vsel %vm1453_vm5, %v367_v59, 0.0 }
  0xf4   : > { %v372_v53 = vadd.f32 %v355_v52, %v342_v31  ;;  %v348_v54 = vrot.slane %v344_v47, 7  ;;  %v361_v55 = vrot.slane %v344_v47, 1  ;;  %v347_v56 = vrot.slane %v343_v48, 7  ;;  %v389_v57 = vpop.permute.xlu0 %388  ;;  %v395_v58 = vpop.permute.xlu1 %394 }
  0xf5   : > { %v360_v61 = vrot.slane %v343_v48, 1  ;;  %v396_v1 = vsel %vm304_vm0, %v389_v57, 0.0  ;;  %v399_v3 = vsel %vm304_vm0, %v395_v58, 0.0 }
  0xf6   : > { %v351_v63 = vsel %vm350_vm2, %v348_v54, %v349_v37  ;;  %v353_v0 = vsel %vm350_vm2, %v346_v38, %v347_v56  ;;  %v352_v19 = vsel %vm350_vm2, %v347_v56, %v348_v54  ;;  %v412_v25 = vadd.f32 %v396_v1, %v1392_v4 }
  0xf7   : > { %v375_v8 = vadd.f32 %v351_v63, %v1432_v29  ;;  %v365_v10 = vsel %vm363_vm4, %v360_v61, %v361_v55  ;;  %v366_v11 = vsel %vm363_vm4, %v359_v42, %v360_v61  ;;  %v373_v13 = vadd.f32 %v353_v0, %v343_v48 }
  0xf8   : > { %v369_v15 = vsel %vm1461_vm6, %v365_v10, 0.0  ;;  %v376_v16 = vadd.f32 %v372_v53, %v366_v11  ;;  %v391_v17 = vpop.permute.xlu0 %390  ;;  %v393_v18 = vpop.permute.xlu1 %392  ;;  %v415_v26 = vadd.f32 %v399_v3, %v1394_v5  ;;  %v357_v27 = vsel %vm1465_vm7, %v352_v19, 0.0 }
  0xf9   : > { %v379_v20 = vadd.f32 %v375_v8, %v371_v14  ;;  %v377_v21 = vadd.f32 %v373_v13, %v369_v15  ;;  %v397_v22 = vsel %vm304_vm0, %v391_v17, 0.0  ;;  %v398_v23 = vsel %vm304_vm0, %v393_v18, 0.0 }
  0xfa   : > { %v384_v24 = vsub.f32 %v380_v49, %v376_v16  ;;  %v374_v31 = vadd.f32 %v357_v27, %v344_v47  ;;  %v364_v33 = vsel %vm363_vm4, %v361_v55, %v362_v41  ;;  %v413_v35 = vadd.f32 %v397_v22, %v1398_v6 }
  0xfb   : > { %v387_v29 = vsub.f32 %v383_v50, %v379_v20  ;;  %v385_v30 = vsub.f32 %v381_v45, %v377_v21  ;;  %v414_v36 = vadd.f32 %v398_v23, %v1400_v7  ;;  %v452_v3 = vmul.f32 9.0, %v1392_v4 }
  0xfc   : > { %v831_v34 = vmul.f32 -1.442695, %v384_v24  ;;  %v401_v37 = vpop.permute.xlu0 %400  ;;  %v407_v38 = vpop.permute.xlu1 %406  ;;  %v378_v41 = vadd.f32 %v374_v31, %v364_v33  ;;  %v454_v17 = vmul.f32 9.0, %v1400_v7  ;;  %v453_v19 = vmul.f32 9.0, %v1398_v6 }
  0xfd   : > { %v834_v39 = vmul.f32 -1.442695, %v387_v29  ;;  %v832_v40 = vmul.f32 -1.442695, %v385_v30  ;;  %v408_v42 = vsel %vm305_vm1, %v401_v37, 0.0  ;;  %v411_v2 = vsel %vm305_vm1, %v407_v38, 0.0 }
  0xfe   : > { %937 = vpow2.f32 %v831_v34  ;;  %v1505_v43 = vadd.f32 %v412_v25, %v408_v42  ;;  %v1507_v44 = vadd.f32 %v415_v26, %v411_v2  ;;  %v386_v50 = vsub.f32 %v382_v28, %v378_v41 }
  0xff   : > { %939 = vpow2.f32 %v834_v39  ;;  %v1152_v7 = vmov 0.0   ;;  %vm620_vm0 = vcmask 261120  }
 0x100   : > { %941 = vpow2.f32 %v832_v40  ;;  %v420_v45 = vrot.slane %v1505_v43, 7  ;;  %v423_v46 = vrot.slane %v1507_v44, 7  ;;  %v403_v47 = vpop.permute.xlu0 %402  ;;  %v405_v48 = vpop.permute.xlu1 %404  ;;  %v432_v53 = vrot.slane %v1505_v43, 1  ;;  %859 = vmatprep.mubr.msk.f32.mxu0 %vm1154_vm12, %v1152_v7 }
 0x101   : > { %v409_v49 = vsel %vm305_vm1, %v403_v47, 0.0  ;;  %v410_v52 = vsel %vm305_vm1, %v405_v48, 0.0  ;;  %v833_v57 = vmul.f32 -1.442695, %v386_v50  ;;  %v435_v0 = vrot.slane %v1507_v44, 1 }
 0x102   : > { %v427_v54 = vsel %vm350_vm2, %v423_v46, %v420_v45  ;;  %v417_v55 = vadd.f32 %v413_v35, %v409_v49  ;;  %v1520_v56 = vadd.f32 %v414_v36, %v410_v52  ;;  %vm694_vm1 = vcmask 25600  }
 0x103   : > { %v428_v58 = vsel %vm1435_vm3, %v427_v54, 0.0  ;;  %943 = vpow2.f32 %v833_v57 }
 0x104   : > { %v421_v59 = vrot.slane %v417_v55, 7  ;;  %v433_v61 = vrot.slane %v417_v55, 1  ;;  %v422_v63 = vrot.slane %v1520_v56, 7  ;;  %v434_v9 = vrot.slane %v1520_v56, 1 }
 0x105   : > { %v444_v1 = vadd.f32 %v428_v58, %v1505_v43 }
 0x106   : > { %v426_v8 = vsel %vm350_vm2, %v420_v45, %v421_v59  ;;  %v425_v32 = vsel %vm350_vm2, %v421_v59, %v422_v63  ;;  %v438_v10 = vsel %vm363_vm4, %v432_v53, %v433_v61  ;;  %v436_v4 = vsel %vm363_vm4, %v434_v9, %v435_v0 }
 0x107   : > { %v445_v11 = vadd.f32 %v426_v8, %v417_v55  ;;  %v430_v13 = vsel %vm1465_vm7, %v425_v32, 0.0  ;;  %v448_v14 = vadd.f32 %v444_v1, %v438_v10  ;;  %v437_v18 = vsel %vm363_vm4, %v433_v61, %v434_v9 }
 0x108   : > { %v938_v15 = vpop.eup %937  ;;  %v446_v16 = vadd.f32 %v430_v13, %v1520_v56  ;;  %v441_v22 = vsel %vm1461_vm6, %v437_v18, 0.0 }
 0x109   : > { %v940_v20 = vpop.eup %939  ;;  %v484_v21 = vadd.f32 1.0, %v938_v15  ;;  %v456_v62 = vsub.f32 %v452_v3, %v448_v14  ;;  %v449_v26 = vadd.f32 %v445_v11, %v441_v22 }
 0x10a   : > { %v942_v23 = vpop.eup %941  ;;  %v487_v24 = vadd.f32 1.0, %v940_v20  ;;  %v450_v25 = vadd.f32 %v446_v16, %v436_v4  ;;  %v424_v20 = vsel %vm350_vm2, %v422_v63, %v423_v46 }
 0x10b   : > { %v485_v27 = vadd.f32 1.0, %v942_v23  ;;  %945 = vrcp.f32 %v484_v21  ;;  %vm460_vm8 = vcmp.gt.f32.partialorder %v456_v62, 0.2  ;;  %v457_v6 = vsub.f32 %v453_v19, %v449_v26 }
 0x10c   : > { %947 = vrcp.f32 %v487_v24  ;;  %v1553_v28 = vsel %vm460_vm8, 1.0, %v1152_v7  ;;  %v458_v29 = vsub.f32 %v454_v17, %v450_v25  ;;  %v439_v62 = vsel %vm363_vm4, %v435_v0, %v432_v53 }
 0x10d   : > { %949 = vrcp.f32 %v485_v27  ;;  %588 = vadd.xlane.f32.xlu1 %v1553_v28  ;;  %vm461_vm10 = vcmp.gt.f32.partialorder %v457_v6, 0.2  ;;  %v944_v60 = vpop.eup %943  ;;  %v552_v61 = vsub.f32 1.0, %v1553_v28  ;;  %v447_v56 = vadd.f32 %v424_v20, %v1507_v44 }
 0x10e   : > { %vm462_vm9 = vcmp.gt.f32.partialorder %v458_v29, 0.2  ;;  %v1560_v31 = vsel %vm461_vm10, 1.0, %v1152_v7  ;;  %v486_v33 = vadd.f32 1.0, %v944_v60  ;;  %v443_v46 = vsel %vm1453_vm5, %v439_v62, 0.0 }
 0x10f   : > { %v1557_v30 = vsel %vm462_vm9, 1.0, %v1152_v7  ;;  %590 = vadd.xlane.f32.xlu0 %v1560_v31  ;;  %v553_v1 = vsub.f32 1.0, %v1560_v31  ;;  %v451_v63 = vadd.f32 %v447_v56, %v443_v46 }
 0x110   : > { %951 = vrcp.f32 %v486_v33 }
 0x111   : > { %592 = vadd.xlane.f32.xlu1 %v1557_v30  ;;  %v459_v33 = vsub.f32 %v455_v12, %v451_v63 }
 0x113   : > { %vm463_vm11 = vcmp.gt.f32.partialorder %v459_v33, 0.2 }
 0x115   : > { %v946_v34 = vpop.eup %945 }
 0x116   : > { %v948_v35 = vpop.eup %947  ;;  %953 = vlog2.f32 %v946_v34  ;;  %v532_v36 = vsub.f32 1.0, %v946_v34  ;;  %v835_v42 = vmul.f32 -1.442695, %v946_v34  ;;  %v554_v34 = vsub.f32 1.0, %v1557_v30 }
 0x117   : > { %v950_v37 = vpop.eup %949  ;;  %v838_v40 = vmul.f32 -1.442695, %v948_v35  ;;  %v535_v10 = vsub.f32 1.0, %v948_v35 }
 0x118   : > { %955 = vlog2.f32 %v532_v36  ;;  %v533_v38 = vsub.f32 1.0, %v950_v37  ;;  %v836_v39 = vmul.f32 -1.442695, %v950_v37 }
 0x119   : > { %957 = vlog2.f32 %v950_v37 }
 0x11a   : > { %959 = vlog2.f32 %v533_v38  ;;  %v952_v2 = vpop.eup %951 }
 0x11b   : > { %961 = vpow2.f32 %v836_v39  ;;  %v837_v41 = vmul.f32 -1.442695, %v952_v2  ;;  %v534_v47 = vsub.f32 1.0, %v952_v2 }
 0x11c   : > { %963 = vpow2.f32 %v838_v40 }
 0x11d   : > { %965 = vpow2.f32 %v835_v42  ;;  %v830_v42 = vsel %vm463_vm11, 1.0, %v1152_v7 }
 0x11e   : > { %967 = vpow2.f32 %v837_v41 }
 0x11f   : > { %969 = vlog2.f32 %v534_v47 }
 0x120   : > { %v954_v45 = vpop.eup %953  ;;  %971 = vlog2.f32 %v952_v2 }
 0x121   : > { %v521_v48 = vmul.f32 0.6931472, %v954_v45 }
 0x122   : > { %v956_v49 = vpop.eup %955 }
 0x123   : > { %v958_v50 = vpop.eup %957  ;;  %v528_v52 = vmax.f32 %v521_v48, -100.0  ;;  %v537_v54 = vmul.f32 0.6931472, %v956_v49 }
 0x124   : > { %v960_v55 = vpop.eup %959  ;;  %v523_v57 = vmul.f32 0.6931472, %v958_v50 }
 0x125   : > { %v962_v58 = vpop.eup %961  ;;  %v544_v59 = vmax.f32 %v537_v54, -100.0  ;;  %v539_v9 = vmul.f32 0.6931472, %v960_v55  ;;  %v548_v11 = vmul.f32 %v1553_v28, %v528_v52 }
 0x126   : > { %v964_v3 = vpop.eup %963  ;;  %v529_v8 = vmax.f32 %v523_v57, -100.0  ;;  %v509_v32 = vadd.f32 1.0, %v962_v58  ;;  %v1153_v58 = vmov 0.0|0.0  }
 0x127   : > { %v556_v13 = vmul.f32 %v552_v61, %v544_v59  ;;  %v545_v14 = vmax.f32 %v539_v9, -100.0  ;;  %v511_v4 = vadd.f32 1.0, %v964_v3  ;;  %v966_v15 = vpop.eup %965  ;;  %862 = vmatprep.subr.bf16.mxu0 %v1153_v58 }
 0x128   : > { %973 = vrcp.f32 %v509_v32  ;;  %v968_v16 = vpop.eup %967  ;;  %v549_v18 = vmul.f32 %v1560_v31, %v529_v8  ;;  %v508_v24 = vadd.f32 1.0, %v966_v15 }
 0x129   : > { %v560_v17 = vadd.f32 %v556_v13, %v548_v11  ;;  %v557_v19 = vmul.f32 %v553_v1, %v545_v14  ;;  %v510_v21 = vadd.f32 1.0, %v968_v16  ;;  %975 = vlog2.f32 %v535_v10  ;;  %v970_v26 = vpop.eup %969 }
 0x12a   : > { %977 = vrcp.f32 %v511_v4  ;;  %v972_v43 = vpop.eup %971  ;;  %v541_v53 = vmul.f32 0.6931472, %v970_v26 }
 0x12b   : > { %v564_v22 = vsub.f32 0.0, %v560_v17  ;;  %v561_v23 = vadd.f32 %v557_v19, %v549_v18  ;;  %979 = vrcp.f32 %v510_v21  ;;  %v525_v27 = vmul.f32 0.6931472, %v972_v43  ;;  %v619_v43 = vld [vmem:[#allocation2] sm:$0x3] }
 0x12c   : > { %981 = vlog2.f32 %v948_v35  ;;  %v546_v60 = vmax.f32 %v541_v53, -100.0 }
 0x12d   : > { %596 = vadd.xlane.f32.xlu1 %v564_v22  ;;  %v565_v25 = vsub.f32 0.0, %v561_v23  ;;  %983 = vrcp.f32 %v508_v24  ;;  %v530_v51 = vmax.f32 %v525_v27, -100.0 }
 0x12e   : > { %v558_v37 = vmul.f32 %v554_v34, %v546_v60 }
 0x12f   : > { %598 = vadd.xlane.f32.xlu0 %v565_v25  ;;  %v550_v39 = vmul.f32 %v1557_v30, %v530_v51 }
 0x131   : > { %v562_v41 = vadd.f32 %v558_v37, %v550_v39 }
 0x132   : > { %v974_v0 = vpop.eup %973 }
 0x133   : > { %582 = vadd.xlane.f32.xlu0 %v974_v0  ;;  %v976_v29 = vpop.eup %975  ;;  %v569_v36 = vmul.f32 %v974_v0, %v1560_v31  ;;  %v555_v31 = vsub.f32 1.0, %v830_v42  ;;  %v566_v49 = vsub.f32 0.0, %v562_v41 }
 0x134   : > { %v978_v6 = vpop.eup %977  ;;  %v543_v5 = vmul.f32 0.6931472, %v976_v29 }
 0x135   : > { %v980_v44 = vpop.eup %979  ;;  %v571_v45 = vmul.f32 %v978_v6, %v830_v42 }
 0x136   : > { %584 = vadd.xlane.f32.xlu1 %v980_v44  ;;  %v982_v35 = vpop.eup %981  ;;  %v570_v2 = vmul.f32 %v980_v44, %v1557_v30  ;;  %v547_v47 = vmax.f32 %v543_v5, -100.0 }
 0x137   : > { %586 = vadd.xlane.f32.xlu0 %v978_v6  ;;  %v984_v38 = vpop.eup %983  ;;  %v527_v40 = vmul.f32 0.6931472, %v982_v35 }
 0x138   : > { %v568_v50 = vmul.f32 %v984_v38, %v1553_v28  ;;  %v559_v52 = vmul.f32 %v555_v31, %v547_v47 }
 0x139   : > { %v531_v48 = vmax.f32 %v527_v40, -100.0 }
 0x13a   : > { %574 = vadd.xlane.f32.xlu1 %v569_v36 }
 0x13b   : > { %580 = vadd.xlane.f32.xlu0 %v984_v38  ;;  %v551_v54 = vmul.f32 %v830_v42, %v531_v48 }
 0x13d   : > { %v563_v55 = vadd.f32 %v559_v52, %v551_v54 }
 0x13e   : > { %576 = vadd.xlane.f32.xlu1 %v570_v2 }
 0x13f   : > { %578 = vadd.xlane.f32.xlu0 %v571_v45  ;;  %v567_v57 = vsub.f32 0.0, %v563_v55 }
 0x142   : > { %600 = vadd.xlane.f32.xlu1 %v566_v49 }
 0x143   : > { %572 = vadd.xlane.f32.xlu0 %v568_v50 }
 0x147   : > { %594 = vadd.xlane.f32.xlu0 %v830_v42 }
 0x14b   : > { %602 = vadd.xlane.f32.xlu0 %v567_v57 }
 0x19a   : > { %v589_v30 = vpop.xlane.xlu1 %588 }
 0x19c   : > { %v591_v59 = vpop.xlane.xlu0 %590 }
 0x19e   : > { %v593_v61 = vpop.xlane.xlu1 %592 }
 0x1ba   : > { %v597_v1 = vpop.xlane.xlu1 %596 }
 0x1bc   : > { %v599_v9 = vpop.xlane.xlu0 %598 }
 0x1c0   : > { %v583_v3 = vpop.xlane.xlu0 %582 }
 0x1c3   : > { %v585_v28 = vpop.xlane.xlu1 %584 }
 0x1c4   : > { %v587_v8 = vpop.xlane.xlu0 %586 }
 0x1c7   : > { %v575_v10 = vpop.xlane.xlu1 %574 }
 0x1c8   : > { %v581_v32 = vpop.xlane.xlu0 %580  ;;  %v606_v13 = vsel %vm604_vm13, %v575_v10, %v583_v3 }
 0x1c9   : > { %v611_v14 = vsel %vm609_vm14, %v606_v13, %v591_v59 }
 0x1ca   : > { %v616_v18 = vsel %vm614_vm15, %v611_v14, %v599_v9 }
 0x1cb   : > { %v577_v4 = vpop.xlane.xlu1 %576 }
 0x1cc   : > { %v579_v11 = vpop.xlane.xlu0 %578  ;;  %v607_v21 = vsel %vm604_vm13, %v577_v4, %v585_v28 }
 0x1cd   : > { %v608_v22 = vsel %vm604_vm13, %v579_v11, %v587_v8  ;;  %v612_v23 = vsel %vm609_vm14, %v607_v21, %v593_v61 }
 0x1cf   : > { %v601_v62 = vpop.xlane.xlu1 %600 }
 0x1d0   : > { %v573_v7 = vpop.xlane.xlu0 %572  ;;  %v617_v56 = vsel %vm614_vm15, %v612_v23, %v601_v62 }
 0x1d1   : > { %v605_v15 = vsel %vm604_vm13, %v573_v7, %v581_v32 }
 0x1d2   : > { %v610_v16 = vsel %vm609_vm14, %v605_v15, %v589_v30 }
 0x1d3   : > { %v615_v17 = vsel %vm614_vm15, %v610_v16, %v597_v1 }
 0x1d4   : > { %v595_v19 = vpop.xlane.xlu0 %594  ;;  %v863_v20 = vpack.c.bf16 %v616_v18, %v615_v17 }
 0x1d5   : > { %v613_v24 = vsel %vm609_vm14, %v608_v22, %v595_v19 }
 0x1d6   : > { %864 = vmatpush3.bf16.msra.mxu0 %v863_v20 }
 0x1d7   : > { %865 = vmatprep.subr.bf16.mxu0 %v1153_v58 }
 0x1d8   : > { %v603_v25 = vpop.xlane.xlu0 %602 }
 0x1d9   : > { %v618_v26 = vsel %vm614_vm15, %v613_v24, %v603_v25 }
 0x1da   : > { %v866_v46 = vpack.c.bf16 %v618_v26, %v617_v56 }
 0x1dc   : > { %867 = vmatpush3.bf16.msra.mxu0 %v866_v46 }
 0x1df   : > { %860 = vmatmul.mubr.msk.f32.vlgmr.msra.gmra.mrb[0].mxu0 %vm620_vm0, %v619_v43 }
 0x2b2   : > { %v690_v12 = vpop.f32.mrb[0].mxu0 }
 0x2b3   : > { %695 = vst.msk [vmem:[%s238_s18] sm:$0x3] %vm694_vm1, %v690_v12  ;;  %v861_v53 = vpop.f32.mrb[1].mxu0 }
 0x2b4   : > { %1086 = shalt.err (!%p1083_p10)
}
 0x2b5   : > { %s1087_s6 = scalar_lea.hbm %s1608_s20, 32  ;;  %s1091_s11 = scalar_lea.hbm %s1655_s3, 64 }
 0x2b6   : > { %p1088_p8 = scmp.ne.s32.totalorder %s1608_s20, %s1087_s6  ;;  %p1092_p6 = scmp.lt.u32.totalorder %s1608_s20, %s1655_s3 }
 0x2b7   : > { %p1093_p12 = scmp.lt.u32.totalorder %s1091_s11, %s1087_s6  ;;  %p1095_p9 = scmp.lt.u32.totalorder %s1087_s6, %s1608_s20 }
 0x2b8   : > { %p1089_p7 = pnand %p1088_p8, %p1680_p1 }
 0x2b9   : > { %p1094_p0 = por %p1093_p12, %p1092_p6 }
 0x2ba   : > { %p1090_p4 = pneg %p1089_p7 }
 0x2bb   : > { %p1096_p11 = por %p1095_p9, %p1094_p0 }
 0x2bd   : > { %p1097_p13 = pnand %p1096_p11, %p1090_p4 }
 0x2bf   : > { %1100 = shalt.err (!%p1097_p13)
}
 0x2c0   : > { %876 = dma.vmem_to_hbm [thread:$0]  (%p1680_p1), %s1610_s24, 32, %s1608_s20, %s697_s21  }
 0x2c1 PF: > { %s722_s5 = sand.u32 1, %s1131_s12   ;;  %p1681_p3 = scmp.ne.s32.totalorder %s1663_s26, 0 }
 0x2c2   : > { %p1682_p2 = scmp.ge.s32.totalorder %s1143_s15, 2  ;;  %s723_s17 = scalar_lea.sflag [#allocation4], %s722_s5 }
 0x2c4   : > { %p890_p5 = pnand %p1682_p2, %p1681_p3 }
 0x2c6   : > { %1126 = dma.done.wait (!%p890_p5), %s723_s17, 32  }
 0x2c7   : > { %1128 = vsyncadd (!%p890_p5), %s723_s17, 4294967264  ;;  %p17_p10 = scmp.ge.s32.totalorder %s1197_s16, 4   ;;  %s1683_s12 = smov %s1135_s13 }
 0x2c8   : > { %s1684_s13 = smov %s1139_s14  ;;  %s1685_s14 = smov %s1208_s19 }
 0x2c9   : > { %s1686_s15 = smov %s1197_s16  ;;  %19 = sbr.rel (!%p17_p10) target bundleno = 6 (0x6), region = 93 }
 0x2d0   :  { %728 = vsyncpa [#allocation3], 1 }
 0x2d1   :  { %730 = vsyncpa [#allocation3 + $0x1], 1 }
 0x2d2   :  { %731 = vsyncpa [#allocation6], 1 }
 0x2d3   :  { %733 = vsyncpa [#allocation6 + $0x1], 1 }
 0x2d4   :  { %734 = vsyncpa [#allocation4], 1 }
 0x2d5   :  { %736 = vsyncpa [#allocation4 + $0x1], 1 }

</bundles_post_ra>
